<compile_context>
chip_gen: v6e
topology: v6e:2x2x1
jax: 0.10.0
libtpu: 0.0.40
codegen_flags: <defaults>
</compile_context>

<pallas_src>
import math
from typing import NamedTuple, Tuple

import jax
import jax.numpy as jnp
from jax.experimental import pallas as pl
from jax.experimental.pallas import tpu as pltpu


def _round_up(n, m):
    return ((n + m - 1) // m) * m


def _cdiv(a, b):
    return -(-a // b)


# ---------------------------------------------------------------------------
# Chip detection / budgets
# ---------------------------------------------------------------------------

def _tpu_generation():
    try:
        kind = jax.devices()[0].device_kind.lower()
    except Exception:
        return "unknown"
    if "v5 lite" in kind or "v5lite" in kind or "v5e" in kind:
        return "v5e"
    if "v6" in kind:
        return "v6e"
    if "v7" in kind or "7x" in kind:
        return "v7x"
    if "v5" in kind:
        return "v5p"
    return "unknown"


def _vmem_capacity_bytes():
    try:
        info = pltpu.get_tpu_info()
    except Exception:
        return None
    for attr in ("vmem_capacity_bytes", "vmem_size_bytes", "vmem_bytes"):
        v = getattr(info, attr, None)
        if isinstance(v, int) and v > 0:
            return v
    return None


def _vmem_cap_bytes(gen):
    phys = _vmem_capacity_bytes()
    if phys:
        return int(phys * 0.85)      # leave headroom for compiler scratch/pipeline
    if gen == "v7x":
        return 56 << 20              # 64 MiB per-TC physical -> never ask for all of it
    if gen in ("v5e", "v6e", "v5p"):
        return 100 << 20             # 128 MiB physical
    return 64 << 20


def _pick_batch_tile(batch, gen):
    b8 = _round_up(max(batch, 1), 8)
    if gen == "v5e":
        cap = 128                    # 128x128 MXUs: bigger tiles only add vreg pressure
    elif gen == "v6e":
        cap = 512 if b8 >= 512 else 256   # resident weights -> larger tile ~ HBM roofline
    else:
        cap = 256
    if gen == "v7x" and b8 > 8:
        # Guarantee >= 2 grid steps so dimension_semantics=("parallel",) really
        # shards the batch across both TensorCores.
        cap = min(cap, _round_up(_cdiv(b8, 2), 8))
    if b8 <= cap:
        return b8
    # Avoid padding a large fraction of a tile when B sits between tile counts.
    n_tiles = _cdiv(b8, cap)
    return min(cap, _round_up(_cdiv(b8, n_tiles), 8))


# ---------------------------------------------------------------------------
# Parameter packing (done ONCE, outside the per-call path)
# ---------------------------------------------------------------------------

class PackedMLPParams(NamedTuple):
    weights: Tuple[jax.Array, ...]   # bf16, zero-padded to [Kp, Np]
    biases: Tuple[jax.Array, ...]    # f32,  zero-padded to [1, Np]
    dims: Tuple[int, ...]            # true widths: (in, h0, ..., out)
    dims_pad: Tuple[int, ...]        # lane-dense 128-multiple widths


def prepare_mlp_params(params):
    """Pad every (W[in,out], b[out]) to lane-dense 128-multiples, cast once.

    Zero padding keeps the math exact for valid rows/cols. Call this once at
    model-build time; mlp_forward then only pads/casts x.
    """
    dims = [params[0][0].shape[0]] + [W.shape[1] for (W, _) in params]
    dims_pad = [_round_up(d, 128) for d in dims]
    weights, biases = [], []
    for li, (W, b) in enumerate(params):
        Kp, Np = dims_pad[li], dims_pad[li + 1]
        if W.shape == (Kp, Np):
            W_p = W.astype(jnp.bfloat16)
        else:
            W_p = jnp.zeros((Kp, Np), jnp.bfloat16)
            W_p = W_p.at[:W.shape[0], :W.shape[1]].set(W.astype(jnp.bfloat16))
        b_p = jnp.zeros((1, Np), jnp.float32)
        b_p = b_p.at[0, :b.shape[0]].set(b.astype(jnp.float32))
        weights.append(W_p)
        biases.append(b_p)
    return PackedMLPParams(tuple(weights), tuple(biases), tuple(dims), tuple(dims_pad))


# ---------------------------------------------------------------------------
# Fused kernel
# ---------------------------------------------------------------------------

def _make_mlp_kernel(num_hidden, nonlinearity, out_valid, out_pad):
    """num_hidden x (Linear->act), then Linear -> masked log_softmax."""
    if nonlinearity == "relu":
        act = lambda a: jnp.maximum(a, 0.0)
    elif nonlinearity == "sigmoid":
        act = jax.nn.sigmoid
    elif nonlinearity == "tanh":
        act = jnp.tanh
    else:
        raise ValueError(
            f'Specified activation function "{nonlinearity}" is not recognized.')

    def kernel(*refs):
        # refs = x_tile, (w0, b0), ..., (w_out, b_out), out_tile
        x_ref = refs[0]
        out_ref = refs[-1]
        param_refs = refs[1:-1]

        h = x_ref[...]  # bf16 [TB, K0_pad] -> straight onto the MXU

        # Hidden layers: Linear (bf16 MXU, f32 acc) -> f32 activation -> bf16.
        for k in range(num_hidden):
            w_ref = param_refs[2 * k]
            b_ref = param_refs[2 * k + 1]
            a = jnp.dot(h, w_ref[...], preferred_element_type=jnp.float32)
            a = a + b_ref[...]                      # f32 bias on the VPU
            h = act(a).astype(jnp.bfloat16)

        # F.dropout with training=False is the identity -> no-op here.
        # TODO(synk): training-mode dropout (p>0) would need pltpu.prng_* masking.

        # Output layer.
        wo_ref = param_refs[2 * num_hidden]
        bo_ref = param_refs[2 * num_hidden + 1]
        logits = jnp.dot(h, wo_ref[...], preferred_element_type=jnp.float32)
        logits = logits + bo_ref[...]

        # Padded output columns must not participate in the softmax.
        # (Mask + softmax stay f32; -1e30 would become -inf/NaN in bf16.)
        if out_valid < out_pad:
            col = jax.lax.broadcasted_iota(jnp.int32, logits.shape, 1)
            logits = jnp.where(col < out_valid, logits, -1e30)

        # log_softmax along the feature axis (dim=1), all in f32.
        m = jnp.max(logits, axis=1, keepdims=True)
        shifted = logits - m
        lse = jnp.log(jnp.sum(jnp.exp(shifted), axis=1, keepdims=True))
        out_ref[...] = (shifted - lse).astype(out_ref.dtype)

    return kernel


# ---------------------------------------------------------------------------
# Forward wrapper
# ---------------------------------------------------------------------------

def mlp_forward(x, params, nonlinearity="relu", batch_tile=None):
    """params: PackedMLPParams (from prepare_mlp_params; preferred) or a raw
    list of (W[in,out], b[out]) tuples (packed on the fly).

    Returns log_softmax(MLP(x)) with shape [B, out_size] in float32,
    matching MLP.forward(x, is_training=False).
    """
    if not isinstance(params, PackedMLPParams):
        params = prepare_mlp_params(list(params))

    B, F_in = x.shape
    dims, dims_pad = params.dims, params.dims_pad
    assert F_in == dims[0], f"x has {F_in} features, params expect {dims[0]}"
    num_hidden = len(params.weights) - 1
    out_size, out_pad = dims[-1], dims_pad[-1]
    gen = _tpu_generation()

    # Batch tile (multiple of 8 sublanes), per-generation default.
    TB = _pick_batch_tile(B, gen) if batch_tile is None else _round_up(batch_tile, 8)
    B_pad = _round_up(B, TB)

    # Per-call work on x only: skip the zero-pad copy when already aligned.
    if B_pad == B and dims_pad[0] == F_in:
        x_p = x.astype(jnp.bfloat16)
    else:
        x_p = jnp.zeros((B_pad, dims_pad[0]), jnp.bfloat16)
        x_p = x_p.at[:B, :F_in].set(x.astype(jnp.bfloat16))

    kernel = _make_mlp_kernel(num_hidden, nonlinearity, out_size, out_pad)

    w_bytes = sum(int(w.size) * 2 for w in params.weights)
    b_bytes = sum(int(b.size) * 4 for b in params.biases)
    flops = 2 * B_pad * sum(dims_pad[i] * dims_pad[i + 1]
                            for i in range(len(dims_pad) - 1))
    bytes_accessed = int(x_p.size) * 2 + w_bytes + b_bytes + B_pad * out_pad * 4
    vmem_cap = _vmem_cap_bytes(gen)

    def run(single_buffer_weights):
        wspec_kwargs = {}
        if single_buffer_weights:
            # Grid-invariant weights/biases: one VMEM buffer is enough.
            wspec_kwargs = dict(pipeline_mode=pl.Buffered(1))

        flat_args = [x_p]
        in_specs = [pl.BlockSpec((TB, dims_pad[0]), lambda i: (i, 0))]
        for li in range(num_hidden + 1):
            Kp, Np = dims_pad[li], dims_pad[li + 1]
            flat_args.append(params.weights[li])
            # Constant block index -> weight stays VMEM-resident across grid steps.
            in_specs.append(pl.BlockSpec((Kp, Np), lambda i: (0, 0), **wspec_kwargs))
            flat_args.append(params.biases[li])
            in_specs.append(pl.BlockSpec((1, Np), lambda i: (0, 0), **wspec_kwargs))

        # VMEM budget: resident weights/biases (1x single-buffered, 2x if the
        # default pipeline double-buffers them), double-buffered x/out tiles,
        # per-layer intermediates (f32 acc + bf16 h), softmax epilogue.
        wbuf = 1 if single_buffer_weights else 2
        resident = wbuf * (w_bytes + b_bytes)
        io_tiles = 2 * TB * dims_pad[0] * 2 + 2 * TB * out_pad * 4
        intermediates = TB * max(dims_pad[1:]) * (4 + 2) + 3 * TB * out_pad * 4
        vmem_need = resident + io_tiles + intermediates + (2 << 20)
        # TODO(synk): when vmem_need > vmem_cap (very wide hidden layers,
        # especially on v7x's 64 MiB VMEM), switch to a weight-streaming path
        # (extra grid axis over layers/K or pltpu.emit_pipeline) instead of
        # full weight residency.
        vmem_limit = int(min(vmem_cap, max(vmem_need, 16 << 20)))

        return pl.pallas_call(
            kernel,
            out_shape=jax.ShapeDtypeStruct((B_pad, out_pad), jnp.float32),
            grid=(B_pad // TB,),
            in_specs=in_specs,
            out_specs=pl.BlockSpec((TB, out_pad), lambda i: (i, 0)),
            compiler_params=pltpu.CompilerParams(
                dimension_semantics=("parallel",),
                vmem_limit_bytes=vmem_limit),
            cost_estimate=pl.CostEstimate(
                flops=flops,
                transcendentals=B_pad * out_pad + B_pad,
                bytes_accessed=bytes_accessed),
        )(*flat_args)

    if hasattr(pl, "Buffered"):
        try:
            out = run(True)
        except Exception:
            out = run(False)   # fall back to default (double-buffered) specs
    else:
        out = run(False)

    # Strip batch/feature padding.
    return out[:B, :out_size]


# ---------------------------------------------------------------------------
# Deterministic parameter init mirroring MLP.init_parameters
# ---------------------------------------------------------------------------

def init_mlp_params(key, inp_size, h_sizes, out_size, nonlinearity="relu",
                    init_type="glorot"):
    sizes = [inp_size] + list(h_sizes) + [out_size]
    params = []
    if nonlinearity == "relu":
        gain = math.sqrt(2.0)
    elif nonlinearity == "tanh":
        gain = 5.0 / 3.0
    else:
        gain = 1.0
    for i in range(len(sizes) - 1):
        fan_in, fan_out = sizes[i], sizes[i + 1]
        key, sub = jax.random.split(key)
        if init_type == "glorot":
            std = gain * math.sqrt(2.0 / (fan_in + fan_out))
            W = std * jax.random.normal(sub, (fan_in, fan_out), dtype=jnp.float32)
        else:  # 'standard'
            stdv = 1.0 / math.sqrt(fan_in)
            W = jax.random.uniform(sub, (fan_in, fan_out), minval=-stdv,
                                   maxval=stdv, dtype=jnp.float32)
        b = jnp.zeros((fan_out,), dtype=jnp.float32)  # nn.init.constant(bias, 0)
        params.append((W, b))
    return params


if __name__ == "__main__":
    key = jax.random.PRNGKey(0)

    # Small shapes consistent with the module's forward.
    batch = 8
    inp_size = 32
    h_sizes = [64, 64]
    out_size = 16
    dropout_p = 0.5  # unused at inference (is_training=False -> dropout is identity)

    k_x, k_p = jax.random.split(key)
    x = jax.random.normal(k_x, (batch, inp_size), dtype=jnp.float32)
    params = init_mlp_params(k_p, inp_size, h_sizes, out_size,
                             nonlinearity="relu", init_type="glorot")

    # Pack/pad/cast weights once (hoisted out of the per-call path).
    packed = prepare_mlp_params(params)

    out = mlp_forward(x, packed, nonlinearity="relu")
    out = jax.block_until_ready(out)

    # Sanity checks: f32 reference (loose tolerance due to bf16 MXU inputs)
    # and exact log_softmax normalization property.
    h = x
    for (W, b) in params[:-1]:
        h = jnp.maximum(h @ W + b, 0.0)
    logits = h @ params[-1][0] + params[-1][1]
    ref = jax.nn.log_softmax(logits, axis=1)

    assert out.shape == (batch, out_size)
    assert jnp.allclose(out, ref, atol=3e-2, rtol=3e-2), "mismatch vs f32 reference"
    row_sums = jnp.sum(jnp.exp(out), axis=1)
    assert jnp.allclose(row_sums, jnp.ones_like(row_sums), atol=1e-3), \
        "log_softmax rows do not normalize"

    print("KERNEL_OK")
</pallas_src>

<mosaic_0001>
module attributes {stable_mosaic.version = 11 : i64} {
  func.func @kernel(%arg0: i32, %arg1: memref<8x128xbf16, #tpu.memory_space<vmem>>, %arg2: memref<128x128xbf16, #tpu.memory_space<vmem>>, %arg3: memref<1x128xf32, #tpu.memory_space<vmem>>, %arg4: memref<128x128xbf16, #tpu.memory_space<vmem>>, %arg5: memref<1x128xf32, #tpu.memory_space<vmem>>, %arg6: memref<128x128xbf16, #tpu.memory_space<vmem>>, %arg7: memref<1x128xf32, #tpu.memory_space<vmem>>, %arg8: memref<8x128xf32, #tpu.memory_space<vmem>>) attributes {dimension_semantics = [#tpu.dimension_semantics<parallel>], iteration_bounds = array<i64: 1>, scalar_prefetch = 0 : i64, scratch_operands = 0 : i64, tpu.core_type = #tpu.core_type<tc>, window_params = [{transform_indices = @transform_0, window_bounds = array<i64: 8, 128>}, {pipeline_mode = #tpu.pipeline_mode<synchronous>, transform_indices = @transform_1, window_bounds = array<i64: 128, 128>}, {pipeline_mode = #tpu.pipeline_mode<synchronous>, transform_indices = @transform_2, window_bounds = array<i64: 1, 128>}, {pipeline_mode = #tpu.pipeline_mode<synchronous>, transform_indices = @transform_3, window_bounds = array<i64: 128, 128>}, {pipeline_mode = #tpu.pipeline_mode<synchronous>, transform_indices = @transform_4, window_bounds = array<i64: 1, 128>}, {pipeline_mode = #tpu.pipeline_mode<synchronous>, transform_indices = @transform_5, window_bounds = array<i64: 128, 128>}, {pipeline_mode = #tpu.pipeline_mode<synchronous>, transform_indices = @transform_6, window_bounds = array<i64: 1, 128>}, {transform_indices = @transform_7, window_bounds = array<i64: 8, 128>}]} {
    %c0 = arith.constant 0 : index
    %c0_0 = arith.constant 0 : index
    %0 = vector.load %arg1[%c0, %c0_0] : memref<8x128xbf16, #tpu.memory_space<vmem>>, vector<8x128xbf16>
    %c0_1 = arith.constant 0 : index
    %c0_2 = arith.constant 0 : index
    %1 = vector.load %arg2[%c0_1, %c0_2] : memref<128x128xbf16, #tpu.memory_space<vmem>>, vector<128x128xbf16>
    %cst = arith.constant dense<0.000000e+00> : vector<8x128xf32>
    %2 = tpu.matmul %0, %1, %cst {dimension_numbers = #tpu.dot_dimension_numbers<[1], [0], [0], [1], [0, 0, 1, 1], [], []>} : vector<8x128xbf16>, vector<128x128xbf16>, vector<8x128xf32> -> vector<8x128xf32>
    %c0_3 = arith.constant 0 : index
    %c0_4 = arith.constant 0 : index
    %3 = vector.load %arg3[%c0_3, %c0_4] : memref<1x128xf32, #tpu.memory_space<vmem>>, vector<1x128xf32>
    %4 = vector.broadcast %3 : vector<1x128xf32> to vector<8x128xf32>
    %5 = arith.addf %2, %4 : vector<8x128xf32>
    %cst_5 = arith.constant 0.000000e+00 : f32
    %6 = vector.broadcast %cst_5 : f32 to vector<8x128xf32>
    %7 = arith.maximumf %5, %6 : vector<8x128xf32>
    %8 = arith.truncf %7 : vector<8x128xf32> to vector<8x128xbf16>
    %c0_6 = arith.constant 0 : index
    %c0_7 = arith.constant 0 : index
    %9 = vector.load %arg4[%c0_6, %c0_7] : memref<128x128xbf16, #tpu.memory_space<vmem>>, vector<128x128xbf16>
    %cst_8 = arith.constant dense<0.000000e+00> : vector<8x128xf32>
    %10 = tpu.matmul %8, %9, %cst_8 {dimension_numbers = #tpu.dot_dimension_numbers<[1], [0], [0], [1], [0, 0, 1, 1], [], []>} : vector<8x128xbf16>, vector<128x128xbf16>, vector<8x128xf32> -> vector<8x128xf32>
    %c0_9 = arith.constant 0 : index
    %c0_10 = arith.constant 0 : index
    %11 = vector.load %arg5[%c0_9, %c0_10] : memref<1x128xf32, #tpu.memory_space<vmem>>, vector<1x128xf32>
    %12 = vector.broadcast %11 : vector<1x128xf32> to vector<8x128xf32>
    %13 = arith.addf %10, %12 : vector<8x128xf32>
    %cst_11 = arith.constant 0.000000e+00 : f32
    %14 = vector.broadcast %cst_11 : f32 to vector<8x128xf32>
    %15 = arith.maximumf %13, %14 : vector<8x128xf32>
    %16 = arith.truncf %15 : vector<8x128xf32> to vector<8x128xbf16>
    %c0_12 = arith.constant 0 : index
    %c0_13 = arith.constant 0 : index
    %17 = vector.load %arg6[%c0_12, %c0_13] : memref<128x128xbf16, #tpu.memory_space<vmem>>, vector<128x128xbf16>
    %cst_14 = arith.constant dense<0.000000e+00> : vector<8x128xf32>
    %18 = tpu.matmul %16, %17, %cst_14 {dimension_numbers = #tpu.dot_dimension_numbers<[1], [0], [0], [1], [0, 0, 1, 1], [], []>} : vector<8x128xbf16>, vector<128x128xbf16>, vector<8x128xf32> -> vector<8x128xf32>
    %c0_15 = arith.constant 0 : index
    %c0_16 = arith.constant 0 : index
    %19 = vector.load %arg7[%c0_15, %c0_16] : memref<1x128xf32, #tpu.memory_space<vmem>>, vector<1x128xf32>
    %20 = vector.broadcast %19 : vector<1x128xf32> to vector<8x128xf32>
    %21 = arith.addf %18, %20 : vector<8x128xf32>
    %22 = tpu.iota {dimensions = array<i32: 1>} : vector<8x128xi32>
    %c16_i32 = arith.constant 16 : i32
    %23 = vector.broadcast %c16_i32 : i32 to vector<8x128xi32>
    %24 = arith.cmpi slt, %22, %23 : vector<8x128xi32>
    %cst_17 = arith.constant -1.000000e+30 : f32
    %25 = vector.broadcast %cst_17 : f32 to vector<8x128xf32>
    %26 = arith.select %24, %21, %25 : vector<8x128xi1>, vector<8x128xf32>
    %cst_18 = arith.constant dense<0xFF800000> : vector<8xf32>
    %27 = vector.multi_reduction <maximumf>, %26, %cst_18 [1] : vector<8x128xf32> to vector<8xf32>
    %28 = vector.shape_cast %27 : vector<8xf32> to vector<8x1xf32>
    %29 = vector.broadcast %28 : vector<8x1xf32> to vector<8x128xf32>
    %30 = arith.subf %26, %29 : vector<8x128xf32>
    %31 = math.exp %30 : vector<8x128xf32>
    %cst_19 = arith.constant dense<0.000000e+00> : vector<8xf32>
    %32 = vector.multi_reduction <add>, %31, %cst_19 [1] : vector<8x128xf32> to vector<8xf32>
    %33 = vector.shape_cast %32 : vector<8xf32> to vector<8x1xf32>
    %34 = math.log %33 : vector<8x1xf32>
    %35 = vector.broadcast %34 : vector<8x1xf32> to vector<8x128xf32>
    %36 = arith.subf %30, %35 : vector<8x128xf32>
    %c0_20 = arith.constant 0 : index
    %c0_21 = arith.constant 0 : index
    %37 = vector.load %arg8[%c0_20, %c0_21] : memref<8x128xf32, #tpu.memory_space<vmem>>, vector<8x128xf32>
    tpu.vector_store %arg8[%c0_20, %c0_21], %36 {strides = array<i32>} : memref<8x128xf32, #tpu.memory_space<vmem>>, vector<8x128xf32>,
    return
  }
  func.func @transform_0(%arg0: i32) -> (i32, i32) {
    %c0_i32 = arith.constant 0 : i32
    %c0_i32_0 = arith.constant 0 : i32
    return %arg0, %c0_i32 : i32, i32
  }
  func.func @transform_1(%arg0: i32) -> (i32, i32) {
    %c0_i32 = arith.constant 0 : i32
    %c0_i32_0 = arith.constant 0 : i32
    %c0_i32_1 = arith.constant 0 : i32
    return %c0_i32, %c0_i32_0 : i32, i32
  }
  func.func @transform_2(%arg0: i32) -> (i32, i32) {
    %c0_i32 = arith.constant 0 : i32
    %c0_i32_0 = arith.constant 0 : i32
    %c0_i32_1 = arith.constant 0 : i32
    return %c0_i32, %c0_i32_0 : i32, i32
  }
  func.func @transform_3(%arg0: i32) -> (i32, i32) {
    %c0_i32 = arith.constant 0 : i32
    %c0_i32_0 = arith.constant 0 : i32
    %c0_i32_1 = arith.constant 0 : i32
    return %c0_i32, %c0_i32_0 : i32, i32
  }
  func.func @transform_4(%arg0: i32) -> (i32, i32) {
    %c0_i32 = arith.constant 0 : i32
    %c0_i32_0 = arith.constant 0 : i32
    %c0_i32_1 = arith.constant 0 : i32
    return %c0_i32, %c0_i32_0 : i32, i32
  }
  func.func @transform_5(%arg0: i32) -> (i32, i32) {
    %c0_i32 = arith.constant 0 : i32
    %c0_i32_0 = arith.constant 0 : i32
    %c0_i32_1 = arith.constant 0 : i32
    return %c0_i32, %c0_i32_0 : i32, i32
  }
  func.func @transform_6(%arg0: i32) -> (i32, i32) {
    %c0_i32 = arith.constant 0 : i32
    %c0_i32_0 = arith.constant 0 : i32
    %c0_i32_1 = arith.constant 0 : i32
    return %c0_i32, %c0_i32_0 : i32, i32
  }
  func.func @transform_7(%arg0: i32) -> (i32, i32) {
    %c0_i32 = arith.constant 0 : i32
    %c0_i32_0 = arith.constant 0 : i32
    return %arg0, %c0_i32 : i32, i32
  }
}

module attributes {stable_mosaic.version = 11 : i64} {
  func.func @kernel(%arg0: i32, %arg1: memref<8x128xbf16, #tpu.memory_space<vmem>>, %arg2: memref<128x128xbf16, #tpu.memory_space<vmem>>, %arg3: memref<1x128xf32, #tpu.memory_space<vmem>>, %arg4: memref<128x128xbf16, #tpu.memory_space<vmem>>, %arg5: memref<1x128xf32, #tpu.memory_space<vmem>>, %arg6: memref<128x128xbf16, #tpu.memory_space<vmem>>, %arg7: memref<1x128xf32, #tpu.memory_space<vmem>>, %arg8: memref<8x128xf32, #tpu.memory_space<vmem>>) attributes {dimension_semantics = [#tpu.dimension_semantics<parallel>], iteration_bounds = array<i64: 1>, scalar_prefetch = 0 : i64, scratch_operands = 0 : i64, tpu.core_type = #tpu.core_type<tc>, window_params = [{transform_indices = @transform_0, window_bounds = array<i64: 8, 128>}, {pipeline_mode = #tpu.pipeline_mode<synchronous>, transform_indices = @transform_1, window_bounds = array<i64: 128, 128>}, {pipeline_mode = #tpu.pipeline_mode<synchronous>, transform_indices = @transform_2, window_bounds = array<i64: 1, 128>}, {pipeline_mode = #tpu.pipeline_mode<synchronous>, transform_indices = @transform_3, window_bounds = array<i64: 128, 128>}, {pipeline_mode = #tpu.pipeline_mode<synchronous>, transform_indices = @transform_4, window_bounds = array<i64: 1, 128>}, {pipeline_mode = #tpu.pipeline_mode<synchronous>, transform_indices = @transform_5, window_bounds = array<i64: 128, 128>}, {pipeline_mode = #tpu.pipeline_mode<synchronous>, transform_indices = @transform_6, window_bounds = array<i64: 1, 128>}, {transform_indices = @transform_7, window_bounds = array<i64: 8, 128>}]} {
    %c0 = arith.constant 0 : index
    %c0_0 = arith.constant 0 : index
    %0 = vector.load %arg1[%c0, %c0_0] : memref<8x128xbf16, #tpu.memory_space<vmem>>, vector<8x128xbf16>
    %c0_1 = arith.constant 0 : index
    %c0_2 = arith.constant 0 : index
    %1 = vector.load %arg2[%c0_1, %c0_2] : memref<128x128xbf16, #tpu.memory_space<vmem>>, vector<128x128xbf16>
    %cst = arith.constant dense<0.000000e+00> : vector<8x128xf32>
    %2 = tpu.matmul %0, %1, %cst {dimension_numbers = #tpu.dot_dimension_numbers<[1], [0], [0], [1], [0, 0, 1, 1], [], []>} : vector<8x128xbf16>, vector<128x128xbf16>, vector<8x128xf32> -> vector<8x128xf32>
    %c0_3 = arith.constant 0 : index
    %c0_4 = arith.constant 0 : index
    %3 = vector.load %arg3[%c0_3, %c0_4] : memref<1x128xf32, #tpu.memory_space<vmem>>, vector<1x128xf32>
    %4 = vector.broadcast %3 : vector<1x128xf32> to vector<8x128xf32>
    %5 = arith.addf %2, %4 : vector<8x128xf32>
    %cst_5 = arith.constant 0.000000e+00 : f32
    %6 = vector.broadcast %cst_5 : f32 to vector<8x128xf32>
    %7 = arith.maximumf %5, %6 : vector<8x128xf32>
    %8 = arith.truncf %7 : vector<8x128xf32> to vector<8x128xbf16>
    %c0_6 = arith.constant 0 : index
    %c0_7 = arith.constant 0 : index
    %9 = vector.load %arg4[%c0_6, %c0_7] : memref<128x128xbf16, #tpu.memory_space<vmem>>, vector<128x128xbf16>
    %cst_8 = arith.constant dense<0.000000e+00> : vector<8x128xf32>
    %10 = tpu.matmul %8, %9, %cst_8 {dimension_numbers = #tpu.dot_dimension_numbers<[1], [0], [0], [1], [0, 0, 1, 1], [], []>} : vector<8x128xbf16>, vector<128x128xbf16>, vector<8x128xf32> -> vector<8x128xf32>
    %c0_9 = arith.constant 0 : index
    %c0_10 = arith.constant 0 : index
    %11 = vector.load %arg5[%c0_9, %c0_10] : memref<1x128xf32, #tpu.memory_space<vmem>>, vector<1x128xf32>
    %12 = vector.broadcast %11 : vector<1x128xf32> to vector<8x128xf32>
    %13 = arith.addf %10, %12 : vector<8x128xf32>
    %cst_11 = arith.constant 0.000000e+00 : f32
    %14 = vector.broadcast %cst_11 : f32 to vector<8x128xf32>
    %15 = arith.maximumf %13, %14 : vector<8x128xf32>
    %16 = arith.truncf %15 : vector<8x128xf32> to vector<8x128xbf16>
    %c0_12 = arith.constant 0 : index
    %c0_13 = arith.constant 0 : index
    %17 = vector.load %arg6[%c0_12, %c0_13] : memref<128x128xbf16, #tpu.memory_space<vmem>>, vector<128x128xbf16>
    %cst_14 = arith.constant dense<0.000000e+00> : vector<8x128xf32>
    %18 = tpu.matmul %16, %17, %cst_14 {dimension_numbers = #tpu.dot_dimension_numbers<[1], [0], [0], [1], [0, 0, 1, 1], [], []>} : vector<8x128xbf16>, vector<128x128xbf16>, vector<8x128xf32> -> vector<8x128xf32>
    %c0_15 = arith.constant 0 : index
    %c0_16 = arith.constant 0 : index
    %19 = vector.load %arg7[%c0_15, %c0_16] : memref<1x128xf32, #tpu.memory_space<vmem>>, vector<1x128xf32>
    %20 = vector.broadcast %19 : vector<1x128xf32> to vector<8x128xf32>
    %21 = arith.addf %18, %20 : vector<8x128xf32>
    %22 = tpu.iota {dimensions = array<i32: 1>} : vector<8x128xi32>
    %c16_i32 = arith.constant 16 : i32
    %23 = vector.broadcast %c16_i32 : i32 to vector<8x128xi32>
    %24 = arith.cmpi slt, %22, %23 : vector<8x128xi32>
    %cst_17 = arith.constant -1.000000e+30 : f32
    %25 = vector.broadcast %cst_17 : f32 to vector<8x128xf32>
    %26 = arith.select %24, %21, %25 : vector<8x128xi1>, vector<8x128xf32>
    %cst_18 = arith.constant dense<0xFF800000> : vector<8xf32>
    %27 = vector.multi_reduction <maximumf>, %26, %cst_18 [1] : vector<8x128xf32> to vector<8xf32>
    %28 = vector.shape_cast %27 : vector<8xf32> to vector<8x1xf32>
    %29 = vector.broadcast %28 : vector<8x1xf32> to vector<8x128xf32>
    %30 = arith.subf %26, %29 : vector<8x128xf32>
    %31 = math.exp %30 : vector<8x128xf32>
    %cst_19 = arith.constant dense<0.000000e+00> : vector<8xf32>
    %32 = vector.multi_reduction <add>, %31, %cst_19 [1] : vector<8x128xf32> to vector<8xf32>
    %33 = vector.shape_cast %32 : vector<8xf32> to vector<8x1xf32>
    %34 = math.log %33 : vector<8x1xf32>
    %35 = vector.broadcast %34 : vector<8x1xf32> to vector<8x128xf32>
    %36 = arith.subf %30, %35 : vector<8x128xf32>
    %c0_20 = arith.constant 0 : index
    %c0_21 = arith.constant 0 : index
    %37 = vector.load %arg8[%c0_20, %c0_21] : memref<8x128xf32, #tpu.memory_space<vmem>>, vector<8x128xf32>
    tpu.vector_store %arg8[%c0_20, %c0_21], %36 {strides = array<i32>} : memref<8x128xf32, #tpu.memory_space<vmem>>, vector<8x128xf32>,
    return
  }
  func.func @transform_0(%arg0: i32) -> (i32, i32) {
    %c0_i32 = arith.constant 0 : i32
    %c0_i32_0 = arith.constant 0 : i32
    return %arg0, %c0_i32 : i32, i32
  }
  func.func @transform_1(%arg0: i32) -> (i32, i32) {
    %c0_i32 = arith.constant 0 : i32
    %c0_i32_0 = arith.constant 0 : i32
    %c0_i32_1 = arith.constant 0 : i32
    return %c0_i32, %c0_i32_0 : i32, i32
  }
  func.func @transform_2(%arg0: i32) -> (i32, i32) {
    %c0_i32 = arith.constant 0 : i32
    %c0_i32_0 = arith.constant 0 : i32
    %c0_i32_1 = arith.constant 0 : i32
    return %c0_i32, %c0_i32_0 : i32, i32
  }
  func.func @transform_3(%arg0: i32) -> (i32, i32) {
    %c0_i32 = arith.constant 0 : i32
    %c0_i32_0 = arith.constant 0 : i32
    %c0_i32_1 = arith.constant 0 : i32
    return %c0_i32, %c0_i32_0 : i32, i32
  }
  func.func @transform_4(%arg0: i32) -> (i32, i32) {
    %c0_i32 = arith.constant 0 : i32
    %c0_i32_0 = arith.constant 0 : i32
    %c0_i32_1 = arith.constant 0 : i32
    return %c0_i32, %c0_i32_0 : i32, i32
  }
  func.func @transform_5(%arg0: i32) -> (i32, i32) {
    %c0_i32 = arith.constant 0 : i32
    %c0_i32_0 = arith.constant 0 : i32
    %c0_i32_1 = arith.constant 0 : i32
    return %c0_i32, %c0_i32_0 : i32, i32
  }
  func.func @transform_6(%arg0: i32) -> (i32, i32) {
    %c0_i32 = arith.constant 0 : i32
    %c0_i32_0 = arith.constant 0 : i32
    %c0_i32_1 = arith.constant 0 : i32
    return %c0_i32, %c0_i32_0 : i32, i32
  }
  func.func @transform_7(%arg0: i32) -> (i32, i32) {
    %c0_i32 = arith.constant 0 : i32
    %c0_i32_0 = arith.constant 0 : i32
    return %arg0, %c0_i32 : i32, i32
  }
}

</mosaic_0001>

<bundles_post_ra>
// kernel: tpu_custom_call.1
= control target key start
LH: loop header
LB: loop body
LE: loop exit
PB: predicated region body
PF: predicated region fallthrough
CT: control target
= control target key end

     0   :  { %12 = vsyncpa [#allocation3], 0  ;;  %s822_s0 = inlined_call_operand.hbm [shape: bf16[8,128], index: 0, kind: input, shape index: {}]   ;;  %s823_s1 = inlined_call_operand.hbm [shape: bf16[128,128], index: 1, kind: input, shape index: {}]   ;;  %s824_s2 = inlined_call_operand.vmem [shape: f32[1,128], index: 2, kind: input, shape index: {}]   ;;  %s825_s3 = inlined_call_operand.hbm [shape: bf16[128,128], index: 3, kind: input, shape index: {}]   ;;  %s826_s4 = inlined_call_operand.vmem [shape: f32[1,128], index: 4, kind: input, shape index: {}]   ;;  %s827_s5 = inlined_call_operand.hbm [shape: bf16[128,128], index: 5, kind: input, shape index: {}]   ;;  %s828_s6 = inlined_call_operand.vmem [shape: f32[1,128], index: 6, kind: input, shape index: {}]   ;;  %s829_s7 = inlined_call_operand.hbm [shape: f32[8,128], index: 7, kind: output, shape index: {}]  }
   0x1   :  { %13 = vsyncpa [#allocation6], 0 }
   0x2   :  { %14 = vsyncpa [#allocation9], 0 }
   0x3   :  { %15 = vsyncpa [#allocation4], 0  ;;  %s710_s24 = smov [#allocation5]  }
   0x4   :  { %s31_s25 = sshll.u32 %s710_s24, 4  ;;  %s32_s25 = int_to_ptr.vmem [resolvable:$true] %s31_s25 }
   0x5   :  { %s610_s26 = scalar_lea.vmem %s32_s25, 1024  ;;  %p615_p1 = scmp.lt.s32.totalorder %s32_s25, %s32_s25 }
   0x6   :  { %p611_p0 = scmp.ne.s32.totalorder %s32_s25, %s610_s26  ;;  %p616_p2 = scmp.lt.s32.totalorder %s610_s26, %s610_s26 }
   0x8   :  { %p617_p3 = por %p616_p2, %p615_p1 }
   0xa   :  { %p618_p4 = pnand %p617_p3, %p611_p0 }
   0xc   :  { %621 = shalt.err (!%p618_p4)
}
   0xd   :  { %s711_s27 = smov 64   ;;  %s712_s28 = smov 4  }
   0xe   :  { %37 = dma.hbm_to_vmem [thread:$0]  %s823_s1, 1024, %s32_s25, [#allocation6], %s711_s27, %s711_s27, %s712_s28  }
   0xf   :  { %s713_s8 = smov [#allocation2]   ;;  %s714_s10 = smov [#allocation7]  }
  0x10   :  { %s22_s9 = sshll.u32 %s713_s8, 4  ;;  %s45_s11 = sshll.u32 %s714_s10, 4  ;;  %s23_s9 = int_to_ptr.vmem [resolvable:$true] %s22_s9  ;;  %s46_s11 = int_to_ptr.vmem [resolvable:$true] %s45_s11 }
  0x11   :  { %s630_s12 = scalar_lea.vmem %s23_s9, 64  ;;  %p635_p6 = scmp.lt.s32.totalorder %s23_s9, %s23_s9 }
  0x12   :  { %p631_p5 = scmp.ne.s32.totalorder %s23_s9, %s630_s12  ;;  %p636_p7 = scmp.lt.s32.totalorder %s630_s12, %s630_s12 }
  0x14   :  { %p637_p8 = por %p636_p7, %p635_p6 }
  0x16   :  { %p638_p9 = pnand %p637_p8, %p631_p5 }
  0x18   :  { %641 = shalt.err (!%p638_p9)
}
  0x19   :  { %25 = dma.hbm_to_vmem [thread:$0]  %s822_s0, 64, %s23_s9, [#allocation3]  }
  0x1a   :  { %s650_s15 = scalar_lea.vmem %s46_s11, 1024  ;;  %p655_p11 = scmp.lt.s32.totalorder %s46_s11, %s46_s11 }
  0x1b   :  { %p651_p10 = scmp.ne.s32.totalorder %s46_s11, %s650_s15  ;;  %p656_p12 = scmp.lt.s32.totalorder %s650_s15, %s650_s15 }
  0x1d   :  { %p657_p13 = por %p656_p12, %p655_p11 }
  0x1f   :  { %p658_p0 = pnand %p657_p13, %p651_p10 }
  0x21   :  { %661 = shalt.err (!%p658_p0)
}
  0x22   :  { %51 = dma.hbm_to_vmem [thread:$0]  %s825_s3, 1024, %s46_s11, [#allocation6], %s711_s27, %s711_s27, %s712_s28  }
  0x23   :  { %s715_s17 = smov [#allocation8]  }
  0x24   :  { %s59_s18 = sshll.u32 %s715_s17, 4  ;;  %s60_s18 = int_to_ptr.vmem [resolvable:$true] %s59_s18 }
  0x25   :  { %s670_s19 = scalar_lea.vmem %s60_s18, 1024  ;;  %p675_p2 = scmp.lt.s32.totalorder %s60_s18, %s60_s18 }
  0x26   :  { %p671_p1 = scmp.ne.s32.totalorder %s60_s18, %s670_s19  ;;  %p676_p3 = scmp.lt.s32.totalorder %s670_s19, %s670_s19 }
  0x28   :  { %p677_p4 = por %p676_p3, %p675_p2 }
  0x2a   :  { %p678_p5 = pnand %p677_p4, %p671_p1 }
  0x2c   :  { %681 = shalt.err (!%p678_p5)
}
  0x2d   :  { %65 = dma.hbm_to_vmem [thread:$0]  %s827_s5, 1024, %s60_s18, [#allocation9], %s711_s27, %s711_s27, %s712_s28  }
  0x2e   :  { %702 = dma.done.wait [#allocation3], 64  }
  0x2f   :  { %703 = vsyncadd [#allocation3], 4294967232 }
  0x30   :  { %704 = dma.done.wait [#allocation6], 2048  }
  0x31   :  { %705 = vsyncadd [#allocation6], 4294965248 }
  0x32   :  { %706 = dma.done.wait [#allocation9], 1024  }
  0x33   :  { %707 = vsyncadd [#allocation9], 4294966272  ;;  %v716_v0 = vmov 0.0   ;;  %vm717_vm0 = vmmov 0   ;;  %v574_v1 = vld [vmem:[#allocation5 + $0x38] sm:$0xff]   ;;  %v575_v2 = vld [vmem:[#allocation5 + $0x30] sm:$0xff]   ;;  %v419_v42 = vlaneseq }
  0x34   :  { %505 = vmatprep.subr.bf16.mxu0 %v716_v0  ;;  %521 = vmatprep.mubr.msk.bf16.mxu0 %vm717_vm0, %v716_v0  ;;  %v576_v3 = vld [vmem:[#allocation5 + $0x28] sm:$0xff]   ;;  %v582_v4 = vld [vmem:[#allocation7 + $0x38] sm:$0xff]   ;;  %v577_v5 = vld [vmem:[#allocation5 + $0x20] sm:$0xff]  }
  0x35   :  { %525 = vmatprep.subr.bf16.mxu1 %v716_v0  ;;  %541 = vmatprep.mubr.msk.bf16.mxu1 %vm717_vm0, %v716_v0  ;;  %v583_v6 = vld [vmem:[#allocation7 + $0x30] sm:$0xff]   ;;  %v578_v7 = vld [vmem:[#allocation5 + $0x18] sm:$0xff]   ;;  %v584_v8 = vld [vmem:[#allocation7 + $0x28] sm:$0xff]   ;;  %v420_v43 = vand.u32 127, %v419_v42 }
  0x36   :  { %506 = vmatpush3.bf16.msra.mxu0 %v574_v1  ;;  %526 = vmatpush3.bf16.msra.mxu1 %v582_v4  ;;  %v579_v9 = vld [vmem:[#allocation5 + $0x10] sm:$0xff]   ;;  %v585_v10 = vld [vmem:[#allocation7 + $0x20] sm:$0xff]   ;;  %v580_v11 = vld [vmem:[#allocation5 + $0x8] sm:$0xff]  }
  0x37   :  { %507 = vmatprep.subr.bf16.mxu0 %v716_v0  ;;  %527 = vmatprep.subr.bf16.mxu1 %v716_v0  ;;  %v586_v12 = vld [vmem:[#allocation7 + $0x18] sm:$0xff]   ;;  %v581_v13 = vld [vmem:[#allocation5] sm:$0xff]   ;;  %v587_v14 = vld [vmem:[#allocation7 + $0x10] sm:$0xff]   ;;  %vm421_vm1 = vcmp.lt.s32.totalorder %v420_v43, 16 }
  0x38   :  { %v81_v15 = vld [vmem:[#allocation2] sm:$0xf]  ;;  %v588_v16 = vld [vmem:[#allocation7 + $0x8] sm:$0xff]   ;;  %v589_v17 = vld [vmem:[#allocation7] sm:$0xff]  }
  0x39   :  { %v590_v18 = vld [vmem:[#allocation8 + $0x38] sm:$0xff]   ;;  %v591_v19 = vld [vmem:[#allocation8 + $0x30] sm:$0xff]   ;;  %v592_v20 = vld [vmem:[#allocation8 + $0x28] sm:$0xff]  }
  0x3a   :  { %508 = vmatpush3.bf16.msra.mxu0 %v575_v2  ;;  %528 = vmatpush3.bf16.msra.mxu1 %v583_v6  ;;  %v593_v21 = vld [vmem:[#allocation8 + $0x20] sm:$0xff]   ;;  %v594_v22 = vld [vmem:[#allocation8 + $0x18] sm:$0xff]   ;;  %v595_v23 = vld [vmem:[#allocation8 + $0x10] sm:$0xff]  }
  0x3b   :  { %509 = vmatprep.subr.bf16.mxu0 %v716_v0  ;;  %529 = vmatprep.subr.bf16.mxu1 %v716_v0  ;;  %v451_v24 = vld [vmem:[%s824_s2] ss:$0 sm:$0xff]  ;;  %v596_v32 = vld [vmem:[#allocation8 + $0x8] sm:$0xff]   ;;  %v597_v33 = vld [vmem:[#allocation8] sm:$0xff]  }
  0x3c   :  { %v460_v34 = vld [vmem:[%s826_s4] ss:$0 sm:$0xff]  ;;  %s718_s4 = smov [#allocation10]  }
  0x3d   :  { %v469_v44 = vld [vmem:[%s828_s6] ss:$0 sm:$0xff]  ;;  %s440_s24 = sshll.u32 %s718_s4, 4  ;;  %s441_s24 = int_to_ptr.vmem [resolvable:$true] %s440_s24 }
  0x3e   :  { %510 = vmatpush3.bf16.msra.mxu0 %v576_v3  ;;  %530 = vmatpush3.bf16.msra.mxu1 %v584_v8  ;;  %s682_s6 = scalar_lea.vmem %s441_s24, 128  ;;  %p687_p7 = scmp.lt.s32.totalorder %s441_s24, %s441_s24 }
  0x3f   :  { %511 = vmatprep.subr.bf16.mxu0 %v716_v0  ;;  %531 = vmatprep.subr.bf16.mxu1 %v716_v0  ;;  %p683_p6 = scmp.ne.s32.totalorder %s441_s24, %s682_s6  ;;  %p688_p8 = scmp.lt.s32.totalorder %s682_s6, %s682_s6 }
  0x41   :  { %p689_p9 = por %p688_p8, %p687_p7 }
  0x42   :  { %512 = vmatpush3.bf16.msra.mxu0 %v577_v5  ;;  %532 = vmatpush3.bf16.msra.mxu1 %v585_v10 }
  0x43   :  { %513 = vmatprep.subr.bf16.mxu0 %v716_v0  ;;  %533 = vmatprep.subr.bf16.mxu1 %v716_v0  ;;  %p690_p10 = pnand %p689_p9, %p683_p6 }
  0x46   :  { %514 = vmatpush3.bf16.msra.mxu0 %v578_v7  ;;  %534 = vmatpush3.bf16.msra.mxu1 %v586_v12 }
  0x47   :  { %515 = vmatprep.subr.bf16.mxu0 %v716_v0  ;;  %535 = vmatprep.subr.bf16.mxu1 %v716_v0 }
  0x4a   :  { %516 = vmatpush3.bf16.msra.mxu0 %v579_v9  ;;  %536 = vmatpush3.bf16.msra.mxu1 %v587_v14 }
  0x4b   :  { %517 = vmatprep.subr.bf16.mxu0 %v716_v0  ;;  %537 = vmatprep.subr.bf16.mxu1 %v716_v0 }
  0x4e   :  { %518 = vmatpush3.bf16.msra.mxu0 %v580_v11  ;;  %538 = vmatpush3.bf16.msra.mxu1 %v588_v16 }
  0x4f   :  { %519 = vmatprep.subr.bf16.mxu0 %v716_v0  ;;  %539 = vmatprep.subr.bf16.mxu1 %v716_v0 }
  0x52   :  { %520 = vmatpush3.bf16.msra.mxu0 %v581_v13  ;;  %540 = vmatpush3.bf16.msra.mxu1 %v589_v17 }
  0x53   :  { %545 = vmatprep.subr.bf16.mxu0 %v716_v0 }
  0x55   :  { %522 = vmatmul.mubr.bf16.vlgmr.msra.gmra.mxu0 %v81_v15 }
  0x56   :  { %561 = vmatprep.mubr.msk.bf16.mxu0 %vm717_vm0, %v716_v0  ;;  %546 = vmatpush3.bf16.msra.mxu0 %v590_v18 }
  0x57   :  { %547 = vmatprep.subr.bf16.mxu0 %v716_v0 }
  0x5a   :  { %548 = vmatpush3.bf16.msra.mxu0 %v591_v19 }
  0x5b   :  { %549 = vmatprep.subr.bf16.mxu0 %v716_v0 }
  0x5e   :  { %550 = vmatpush3.bf16.msra.mxu0 %v592_v20 }
  0x5f   :  { %551 = vmatprep.subr.bf16.mxu0 %v716_v0 }
  0x62   :  { %552 = vmatpush3.bf16.msra.mxu0 %v593_v21 }
  0x63   :  { %553 = vmatprep.subr.bf16.mxu0 %v716_v0 }
  0x66   :  { %554 = vmatpush3.bf16.msra.mxu0 %v594_v22 }
  0x67   :  { %555 = vmatprep.subr.bf16.mxu0 %v716_v0 }
  0x6a   :  { %556 = vmatpush3.bf16.msra.mxu0 %v595_v23 }
  0x6b   :  { %557 = vmatprep.subr.bf16.mxu0 %v716_v0 }
  0x6e   :  { %558 = vmatpush3.bf16.msra.mxu0 %v596_v32 }
  0x6f   :  { %559 = vmatprep.subr.bf16.mxu0 %v716_v0 }
  0x72   :  { %560 = vmatpush3.bf16.msra.mxu0 %v597_v33 }
 0x115   :  { %v187_v25 = vpop.f32.mrf.mxu0 }
 0x116   :  { %v188_v26 = vadd.f32 %v451_v24, %v187_v25 }
 0x117   :  { %v523_v27 = vpop.f32.mrf.mxu0 }
 0x118   :  { %v193_v28 = vmax.f32 %v188_v26, 0.0 }
 0x119   :  { %v190_v29 = vpop.f32.mrf.mxu0 }
 0x11a   :  { %v194_v30 = vpack.c.bf16 %v193_v28, %v193_v28 }
 0x11b   :  { %v524_v31 = vpop.f32.mrf.mxu0 }
 0x11c   :  { %542 = vmatmul.mubr.bf16.vlgmr.msra.gmra.mxu1 %v194_v30 }
 0x1dc   :  { %v300_v35 = vpop.f32.mrf.mxu1 }
 0x1dd   :  { %v301_v36 = vadd.f32 %v460_v34, %v300_v35 }
 0x1de   :  { %v543_v37 = vpop.f32.mrf.mxu1 }
 0x1df   :  { %v306_v38 = vmax.f32 %v301_v36, 0.0 }
 0x1e0   :  { %v303_v39 = vpop.f32.mrf.mxu1 }
 0x1e1   :  { %v307_v40 = vpack.c.bf16 %v306_v38, %v306_v38 }
 0x1e2   :  { %v544_v41 = vpop.f32.mrf.mxu1 }
 0x1e3   :  { %562 = vmatmul.mubr.bf16.vlgmr.msra.gmra.mxu0 %v307_v40 }
 0x2a3   :  { %v413_v45 = vpop.f32.mrf.mxu0 }
 0x2a4   :  { %v414_v46 = vadd.f32 %v469_v44, %v413_v45 }
 0x2a5   :  { %v563_v47 = vpop.f32.mrf.mxu0 }
 0x2a6   :  { %v422_v48 = vsel %vm421_vm1, %v414_v46, -1e+30 }
 0x2a7   :  { %423 = vmax.xlane.f32.xlu0 %v422_v48  ;;  %v416_v49 = vpop.f32.mrf.mxu0 }
 0x2a9   :  { %v564_v50 = vpop.f32.mrf.mxu0 }
 0x330   :  { %v424_v51 = vpop.xlane.xlu0 %423 }
 0x331   :  { %v425_v52 = vsub.f32 %v422_v48, %v424_v51 }
 0x333   :  { %v426_v53 = vmul.f32 1.442695, %v425_v52 }
 0x335   :  { %598 = vpow2.f32 %v426_v53 }
 0x342   :  { %v599_v54 = vpop.eup %598 }
 0x343   :  { %428 = vadd.xlane.f32.xlu0 %v599_v54 }
 0x3cc   :  { %v429_v55 = vpop.xlane.xlu0 %428 }
 0x3cd   :  { %600 = vlog2.f32 %v429_v55 }
 0x3da   :  { %v601_v56 = vpop.eup %600 }
 0x3db   :  { %v431_v57 = vmul.f32 0.6931472, %v601_v56 }
 0x3dd   :  { %v432_v58 = vsub.f32 %v425_v52, %v431_v57 }
 0x3df   :  { %433 = vst [vmem:[#allocation10] sm:$0xff] %v432_v58 }
 0x3e0   :  { %693 = shalt.err (!%p690_p10)
}
 0x3e1   :  { %443 = dma.vmem_to_hbm [thread:$0]  %s441_s24, 128, %s829_s7, [#allocation4]  }
 0x3e2   :  { %708 = dma.done.wait [#allocation4], 128  }
 0x3e3   :  { %709 = vsyncadd [#allocation4], 4294967168 }
 0x3e4   :  { %447 = vsyncpa [#allocation3], 1 }
 0x3e5   :  { %448 = vsyncpa [#allocation6], 1 }
 0x3e6   :  { %449 = vsyncpa [#allocation9], 1 }
 0x3e7   :  { %450 = vsyncpa [#allocation4], 1 }

// kernel: tpu_custom_call.1
= control target key start
LH: loop header
LB: loop body
LE: loop exit
PB: predicated region body
PF: predicated region fallthrough
CT: control target
= control target key end

     0   :  { %12 = vsyncpa [#allocation3], 0  ;;  %s822_s0 = inlined_call_operand.hbm [shape: bf16[8,128], index: 0, kind: input, shape index: {}]   ;;  %s823_s1 = inlined_call_operand.hbm [shape: bf16[128,128], index: 1, kind: input, shape index: {}]   ;;  %s824_s2 = inlined_call_operand.vmem [shape: f32[1,128], index: 2, kind: input, shape index: {}]   ;;  %s825_s3 = inlined_call_operand.hbm [shape: bf16[128,128], index: 3, kind: input, shape index: {}]   ;;  %s826_s4 = inlined_call_operand.vmem [shape: f32[1,128], index: 4, kind: input, shape index: {}]   ;;  %s827_s5 = inlined_call_operand.hbm [shape: bf16[128,128], index: 5, kind: input, shape index: {}]   ;;  %s828_s6 = inlined_call_operand.vmem [shape: f32[1,128], index: 6, kind: input, shape index: {}]   ;;  %s829_s7 = inlined_call_operand.hbm [shape: f32[8,128], index: 7, kind: output, shape index: {}]  }
   0x1   :  { %13 = vsyncpa [#allocation6], 0 }
   0x2   :  { %14 = vsyncpa [#allocation9], 0 }
   0x3   :  { %15 = vsyncpa [#allocation4], 0  ;;  %s710_s24 = smov [#allocation5]  }
   0x4   :  { %s31_s25 = sshll.u32 %s710_s24, 4  ;;  %s32_s25 = int_to_ptr.vmem [resolvable:$true] %s31_s25 }
   0x5   :  { %s610_s26 = scalar_lea.vmem %s32_s25, 1024  ;;  %p615_p1 = scmp.lt.s32.totalorder %s32_s25, %s32_s25 }
   0x6   :  { %p611_p0 = scmp.ne.s32.totalorder %s32_s25, %s610_s26  ;;  %p616_p2 = scmp.lt.s32.totalorder %s610_s26, %s610_s26 }
   0x8   :  { %p617_p3 = por %p616_p2, %p615_p1 }
   0xa   :  { %p618_p4 = pnand %p617_p3, %p611_p0 }
   0xc   :  { %621 = shalt.err (!%p618_p4)
}
   0xd   :  { %s711_s27 = smov 64   ;;  %s712_s28 = smov 4  }
   0xe   :  { %37 = dma.hbm_to_vmem [thread:$0]  %s823_s1, 1024, %s32_s25, [#allocation6], %s711_s27, %s711_s27, %s712_s28  }
   0xf   :  { %s713_s8 = smov [#allocation2]   ;;  %s714_s10 = smov [#allocation7]  }
  0x10   :  { %s22_s9 = sshll.u32 %s713_s8, 4  ;;  %s45_s11 = sshll.u32 %s714_s10, 4  ;;  %s23_s9 = int_to_ptr.vmem [resolvable:$true] %s22_s9  ;;  %s46_s11 = int_to_ptr.vmem [resolvable:$true] %s45_s11 }
  0x11   :  { %s630_s12 = scalar_lea.vmem %s23_s9, 64  ;;  %p635_p6 = scmp.lt.s32.totalorder %s23_s9, %s23_s9 }
  0x12   :  { %p631_p5 = scmp.ne.s32.totalorder %s23_s9, %s630_s12  ;;  %p636_p7 = scmp.lt.s32.totalorder %s630_s12, %s630_s12 }
  0x14   :  { %p637_p8 = por %p636_p7, %p635_p6 }
  0x16   :  { %p638_p9 = pnand %p637_p8, %p631_p5 }
  0x18   :  { %641 = shalt.err (!%p638_p9)
}
  0x19   :  { %25 = dma.hbm_to_vmem [thread:$0]  %s822_s0, 64, %s23_s9, [#allocation3]  }
  0x1a   :  { %s650_s15 = scalar_lea.vmem %s46_s11, 1024  ;;  %p655_p11 = scmp.lt.s32.totalorder %s46_s11, %s46_s11 }
  0x1b   :  { %p651_p10 = scmp.ne.s32.totalorder %s46_s11, %s650_s15  ;;  %p656_p12 = scmp.lt.s32.totalorder %s650_s15, %s650_s15 }
  0x1d   :  { %p657_p13 = por %p656_p12, %p655_p11 }
  0x1f   :  { %p658_p0 = pnand %p657_p13, %p651_p10 }
  0x21   :  { %661 = shalt.err (!%p658_p0)
}
  0x22   :  { %51 = dma.hbm_to_vmem [thread:$0]  %s825_s3, 1024, %s46_s11, [#allocation6], %s711_s27, %s711_s27, %s712_s28  }
  0x23   :  { %s715_s17 = smov [#allocation8]  }
  0x24   :  { %s59_s18 = sshll.u32 %s715_s17, 4  ;;  %s60_s18 = int_to_ptr.vmem [resolvable:$true] %s59_s18 }
  0x25   :  { %s670_s19 = scalar_lea.vmem %s60_s18, 1024  ;;  %p675_p2 = scmp.lt.s32.totalorder %s60_s18, %s60_s18 }
  0x26   :  { %p671_p1 = scmp.ne.s32.totalorder %s60_s18, %s670_s19  ;;  %p676_p3 = scmp.lt.s32.totalorder %s670_s19, %s670_s19 }
  0x28   :  { %p677_p4 = por %p676_p3, %p675_p2 }
  0x2a   :  { %p678_p5 = pnand %p677_p4, %p671_p1 }
  0x2c   :  { %681 = shalt.err (!%p678_p5)
}
  0x2d   :  { %65 = dma.hbm_to_vmem [thread:$0]  %s827_s5, 1024, %s60_s18, [#allocation9], %s711_s27, %s711_s27, %s712_s28  }
  0x2e   :  { %702 = dma.done.wait [#allocation3], 64  }
  0x2f   :  { %703 = vsyncadd [#allocation3], 4294967232 }
  0x30   :  { %704 = dma.done.wait [#allocation6], 2048  }
  0x31   :  { %705 = vsyncadd [#allocation6], 4294965248 }
  0x32   :  { %706 = dma.done.wait [#allocation9], 1024  }
  0x33   :  { %707 = vsyncadd [#allocation9], 4294966272  ;;  %v716_v0 = vmov 0.0   ;;  %vm717_vm0 = vmmov 0   ;;  %v574_v1 = vld [vmem:[#allocation5 + $0x38] sm:$0xff]   ;;  %v575_v2 = vld [vmem:[#allocation5 + $0x30] sm:$0xff]   ;;  %v419_v42 = vlaneseq }
  0x34   :  { %505 = vmatprep.subr.bf16.mxu0 %v716_v0  ;;  %521 = vmatprep.mubr.msk.bf16.mxu0 %vm717_vm0, %v716_v0  ;;  %v576_v3 = vld [vmem:[#allocation5 + $0x28] sm:$0xff]   ;;  %v582_v4 = vld [vmem:[#allocation7 + $0x38] sm:$0xff]   ;;  %v577_v5 = vld [vmem:[#allocation5 + $0x20] sm:$0xff]  }
  0x35   :  { %525 = vmatprep.subr.bf16.mxu1 %v716_v0  ;;  %541 = vmatprep.mubr.msk.bf16.mxu1 %vm717_vm0, %v716_v0  ;;  %v583_v6 = vld [vmem:[#allocation7 + $0x30] sm:$0xff]   ;;  %v578_v7 = vld [vmem:[#allocation5 + $0x18] sm:$0xff]   ;;  %v584_v8 = vld [vmem:[#allocation7 + $0x28] sm:$0xff]   ;;  %v420_v43 = vand.u32 127, %v419_v42 }
  0x36   :  { %506 = vmatpush3.bf16.msra.mxu0 %v574_v1  ;;  %526 = vmatpush3.bf16.msra.mxu1 %v582_v4  ;;  %v579_v9 = vld [vmem:[#allocation5 + $0x10] sm:$0xff]   ;;  %v585_v10 = vld [vmem:[#allocation7 + $0x20] sm:$0xff]   ;;  %v580_v11 = vld [vmem:[#allocation5 + $0x8] sm:$0xff]  }
  0x37   :  { %507 = vmatprep.subr.bf16.mxu0 %v716_v0  ;;  %527 = vmatprep.subr.bf16.mxu1 %v716_v0  ;;  %v586_v12 = vld [vmem:[#allocation7 + $0x18] sm:$0xff]   ;;  %v581_v13 = vld [vmem:[#allocation5] sm:$0xff]   ;;  %v587_v14 = vld [vmem:[#allocation7 + $0x10] sm:$0xff]   ;;  %vm421_vm1 = vcmp.lt.s32.totalorder %v420_v43, 16 }
  0x38   :  { %v81_v15 = vld [vmem:[#allocation2] sm:$0xf]  ;;  %v588_v16 = vld [vmem:[#allocation7 + $0x8] sm:$0xff]   ;;  %v589_v17 = vld [vmem:[#allocation7] sm:$0xff]  }
  0x39   :  { %v590_v18 = vld [vmem:[#allocation8 + $0x38] sm:$0xff]   ;;  %v591_v19 = vld [vmem:[#allocation8 + $0x30] sm:$0xff]   ;;  %v592_v20 = vld [vmem:[#allocation8 + $0x28] sm:$0xff]  }
  0x3a   :  { %508 = vmatpush3.bf16.msra.mxu0 %v575_v2  ;;  %528 = vmatpush3.bf16.msra.mxu1 %v583_v6  ;;  %v593_v21 = vld [vmem:[#allocation8 + $0x20] sm:$0xff]   ;;  %v594_v22 = vld [vmem:[#allocation8 + $0x18] sm:$0xff]   ;;  %v595_v23 = vld [vmem:[#allocation8 + $0x10] sm:$0xff]  }
  0x3b   :  { %509 = vmatprep.subr.bf16.mxu0 %v716_v0  ;;  %529 = vmatprep.subr.bf16.mxu1 %v716_v0  ;;  %v451_v24 = vld [vmem:[%s824_s2] ss:$0 sm:$0xff]  ;;  %v596_v32 = vld [vmem:[#allocation8 + $0x8] sm:$0xff]   ;;  %v597_v33 = vld [vmem:[#allocation8] sm:$0xff]  }
  0x3c   :  { %v460_v34 = vld [vmem:[%s826_s4] ss:$0 sm:$0xff]  ;;  %s718_s4 = smov [#allocation10]  }
  0x3d   :  { %v469_v44 = vld [vmem:[%s828_s6] ss:$0 sm:$0xff]  ;;  %s440_s24 = sshll.u32 %s718_s4, 4  ;;  %s441_s24 = int_to_ptr.vmem [resolvable:$true] %s440_s24 }
  0x3e   :  { %510 = vmatpush3.bf16.msra.mxu0 %v576_v3  ;;  %530 = vmatpush3.bf16.msra.mxu1 %v584_v8  ;;  %s682_s6 = scalar_lea.vmem %s441_s24, 128  ;;  %p687_p7 = scmp.lt.s32.totalorder %s441_s24, %s441_s24 }
  0x3f   :  { %511 = vmatprep.subr.bf16.mxu0 %v716_v0  ;;  %531 = vmatprep.subr.bf16.mxu1 %v716_v0  ;;  %p683_p6 = scmp.ne.s32.totalorder %s441_s24, %s682_s6  ;;  %p688_p8 = scmp.lt.s32.totalorder %s682_s6, %s682_s6 }
  0x41   :  { %p689_p9 = por %p688_p8, %p687_p7 }
  0x42   :  { %512 = vmatpush3.bf16.msra.mxu0 %v577_v5  ;;  %532 = vmatpush3.bf16.msra.mxu1 %v585_v10 }
  0x43   :  { %513 = vmatprep.subr.bf16.mxu0 %v716_v0  ;;  %533 = vmatprep.subr.bf16.mxu1 %v716_v0  ;;  %p690_p10 = pnand %p689_p9, %p683_p6 }
  0x46   :  { %514 = vmatpush3.bf16.msra.mxu0 %v578_v7  ;;  %534 = vmatpush3.bf16.msra.mxu1 %v586_v12 }
  0x47   :  { %515 = vmatprep.subr.bf16.mxu0 %v716_v0  ;;  %535 = vmatprep.subr.bf16.mxu1 %v716_v0 }
  0x4a   :  { %516 = vmatpush3.bf16.msra.mxu0 %v579_v9  ;;  %536 = vmatpush3.bf16.msra.mxu1 %v587_v14 }
  0x4b   :  { %517 = vmatprep.subr.bf16.mxu0 %v716_v0  ;;  %537 = vmatprep.subr.bf16.mxu1 %v716_v0 }
  0x4e   :  { %518 = vmatpush3.bf16.msra.mxu0 %v580_v11  ;;  %538 = vmatpush3.bf16.msra.mxu1 %v588_v16 }
  0x4f   :  { %519 = vmatprep.subr.bf16.mxu0 %v716_v0  ;;  %539 = vmatprep.subr.bf16.mxu1 %v716_v0 }
  0x52   :  { %520 = vmatpush3.bf16.msra.mxu0 %v581_v13  ;;  %540 = vmatpush3.bf16.msra.mxu1 %v589_v17 }
  0x53   :  { %545 = vmatprep.subr.bf16.mxu0 %v716_v0 }
  0x55   :  { %522 = vmatmul.mubr.bf16.vlgmr.msra.gmra.mxu0 %v81_v15 }
  0x56   :  { %561 = vmatprep.mubr.msk.bf16.mxu0 %vm717_vm0, %v716_v0  ;;  %546 = vmatpush3.bf16.msra.mxu0 %v590_v18 }
  0x57   :  { %547 = vmatprep.subr.bf16.mxu0 %v716_v0 }
  0x5a   :  { %548 = vmatpush3.bf16.msra.mxu0 %v591_v19 }
  0x5b   :  { %549 = vmatprep.subr.bf16.mxu0 %v716_v0 }
  0x5e   :  { %550 = vmatpush3.bf16.msra.mxu0 %v592_v20 }
  0x5f   :  { %551 = vmatprep.subr.bf16.mxu0 %v716_v0 }
  0x62   :  { %552 = vmatpush3.bf16.msra.mxu0 %v593_v21 }
  0x63   :  { %553 = vmatprep.subr.bf16.mxu0 %v716_v0 }
  0x66   :  { %554 = vmatpush3.bf16.msra.mxu0 %v594_v22 }
  0x67   :  { %555 = vmatprep.subr.bf16.mxu0 %v716_v0 }
  0x6a   :  { %556 = vmatpush3.bf16.msra.mxu0 %v595_v23 }
  0x6b   :  { %557 = vmatprep.subr.bf16.mxu0 %v716_v0 }
  0x6e   :  { %558 = vmatpush3.bf16.msra.mxu0 %v596_v32 }
  0x6f   :  { %559 = vmatprep.subr.bf16.mxu0 %v716_v0 }
  0x72   :  { %560 = vmatpush3.bf16.msra.mxu0 %v597_v33 }
 0x115   :  { %v187_v25 = vpop.f32.mrf.mxu0 }
 0x116   :  { %v188_v26 = vadd.f32 %v451_v24, %v187_v25 }
 0x117   :  { %v523_v27 = vpop.f32.mrf.mxu0 }
 0x118   :  { %v193_v28 = vmax.f32 %v188_v26, 0.0 }
 0x119   :  { %v190_v29 = vpop.f32.mrf.mxu0 }
 0x11a   :  { %v194_v30 = vpack.c.bf16 %v193_v28, %v193_v28 }
 0x11b   :  { %v524_v31 = vpop.f32.mrf.mxu0 }
 0x11c   :  { %542 = vmatmul.mubr.bf16.vlgmr.msra.gmra.mxu1 %v194_v30 }
 0x1dc   :  { %v300_v35 = vpop.f32.mrf.mxu1 }
 0x1dd   :  { %v301_v36 = vadd.f32 %v460_v34, %v300_v35 }
 0x1de   :  { %v543_v37 = vpop.f32.mrf.mxu1 }
 0x1df   :  { %v306_v38 = vmax.f32 %v301_v36, 0.0 }
 0x1e0   :  { %v303_v39 = vpop.f32.mrf.mxu1 }
 0x1e1   :  { %v307_v40 = vpack.c.bf16 %v306_v38, %v306_v38 }
 0x1e2   :  { %v544_v41 = vpop.f32.mrf.mxu1 }
 0x1e3   :  { %562 = vmatmul.mubr.bf16.vlgmr.msra.gmra.mxu0 %v307_v40 }
 0x2a3   :  { %v413_v45 = vpop.f32.mrf.mxu0 }
 0x2a4   :  { %v414_v46 = vadd.f32 %v469_v44, %v413_v45 }
 0x2a5   :  { %v563_v47 = vpop.f32.mrf.mxu0 }
 0x2a6   :  { %v422_v48 = vsel %vm421_vm1, %v414_v46, -1e+30 }
 0x2a7   :  { %423 = vmax.xlane.f32.xlu0 %v422_v48  ;;  %v416_v49 = vpop.f32.mrf.mxu0 }
 0x2a9   :  { %v564_v50 = vpop.f32.mrf.mxu0 }
 0x330   :  { %v424_v51 = vpop.xlane.xlu0 %423 }
 0x331   :  { %v425_v52 = vsub.f32 %v422_v48, %v424_v51 }
 0x333   :  { %v426_v53 = vmul.f32 1.442695, %v425_v52 }
 0x335   :  { %598 = vpow2.f32 %v426_v53 }
 0x342   :  { %v599_v54 = vpop.eup %598 }
 0x343   :  { %428 = vadd.xlane.f32.xlu0 %v599_v54 }
 0x3cc   :  { %v429_v55 = vpop.xlane.xlu0 %428 }
 0x3cd   :  { %600 = vlog2.f32 %v429_v55 }
 0x3da   :  { %v601_v56 = vpop.eup %600 }
 0x3db   :  { %v431_v57 = vmul.f32 0.6931472, %v601_v56 }
 0x3dd   :  { %v432_v58 = vsub.f32 %v425_v52, %v431_v57 }
 0x3df   :  { %433 = vst [vmem:[#allocation10] sm:$0xff] %v432_v58 }
 0x3e0   :  { %693 = shalt.err (!%p690_p10)
}
 0x3e1   :  { %443 = dma.vmem_to_hbm [thread:$0]  %s441_s24, 128, %s829_s7, [#allocation4]  }
 0x3e2   :  { %708 = dma.done.wait [#allocation4], 128  }
 0x3e3   :  { %709 = vsyncadd [#allocation4], 4294967168 }
 0x3e4   :  { %447 = vsyncpa [#allocation3], 1 }
 0x3e5   :  { %448 = vsyncpa [#allocation6], 1 }
 0x3e6   :  { %449 = vsyncpa [#allocation9], 1 }
 0x3e7   :  { %450 = vsyncpa [#allocation4], 1 }

</bundles_post_ra>
